<compile_context>
chip_gen: v6e
topology: v6e:2x2x1
jax: 0.10.0
libtpu: 0.0.40
codegen_flags: <defaults>
</compile_context>

<pallas_src>
import functools
import math

import jax
import jax.numpy as jnp
import numpy as np
from jax import lax
from jax.experimental import pallas as pl
from jax.experimental.pallas import tpu as pltpu


def _col_inv_norm(w_tile):
    # Per-column 1/||w||_2 from the weight tile already resident in VMEM.
    # XLU cross-sublane reduce + EUP rsqrt: free filler under the HBM roofline.
    sumsq = jnp.sum(jnp.square(w_tile.astype(jnp.float32)), axis=0, keepdims=True)
    return lax.rsqrt(jnp.maximum(sumsq, 1e-24))   # == 1 / max(||w||_2, 1e-12)


def _cos_only_kernel(x_ref, w_ref, o_ref):
    # y is None path: plain cosine logits (no clamp, no scale), matching torch.
    w = w_ref[...]
    inv = _col_inv_norm(w)                                      # fused normalization
    cos = jnp.dot(x_ref[...], w, preferred_element_type=jnp.float32)
    o_ref[...] = (cos * inv).astype(o_ref.dtype)


def _mv_arc_kernel(y_ref, thresh_ref, gt_ref, x_ref, w_ref, o_ref, *,
                   t, scale, tile_c):
    # y_ref     : (B, 1) int32 labels
    # thresh_ref: (B, 1) f32   hard-example threshold (gt - m  or  cos(theta+m) form)
    # gt_ref    : (B, 1) f32   final_gt value scattered into the target column
    # x_ref     : (B, E)       embeddings (resident across the whole grid)
    # w_ref     : (E, TC)      RAW weight tile (normalization fused in-kernel)
    # o_ref     : (B, TC)      output logits tile
    j = pl.program_id(0)

    w = w_ref[...]
    inv = _col_inv_norm(w)                                      # (1, TC) f32

    # Hot path: MXU matmul on native-dtype operands, f32 accumulate; normalize + clamp.
    cos = jnp.dot(x_ref[...], w, preferred_element_type=jnp.float32)
    cos = jnp.clip(cos * inv, -1.0, 1.0)

    # Mis-classified-vector (hard example) reweighting: two VPU selects.
    hard = (t + 1.0) * cos + t
    out = jnp.where(cos > thresh_ref[...], hard, cos)

    # Scatter final_gt into the target column (overwrites any hard-mask edit there,
    # exactly like torch's scatter_ after the masked assignment).
    b = out.shape[0]
    col = lax.broadcasted_iota(jnp.int32, (b, tile_c), 1)
    onehot = col == (y_ref[...] - j * tile_c)                   # (B, TC)
    out = jnp.where(onehot, gt_ref[...], out)

    o_ref[...] = (out * scale).astype(o_ref.dtype)


def mv_arc_forward(x, weight, y=None, *, fc_type='MV-AM', margin=0.35, t=0.2,
                   scale=32.0, easy_margin=True, tile_c=512, compute_dtype=None,
                   out_dtype=jnp.float32, weight_buffers=None, vmem_limit_bytes=None):
    """Forward pass of the MV_Arc margin head.

    x      : (B, E) embeddings (f32 or bf16; prefer bf16 to halve HBM traffic)
    weight : (E, C) raw class weights (f32 or bf16; prefer bf16 — int8 on v5e/v6e and
             fp8 on v7x are further options, folding the dequant scale into the fused
             per-column inv-norm)   # TODO(synk): int8/fp8 weight-streaming variants.
    y      : (B,)   int labels, or None for plain cosine logits
    """
    if compute_dtype is not None:
        x = x.astype(compute_dtype)
        weight = weight.astype(compute_dtype)

    B, E = x.shape
    E2, C = weight.shape
    assert E == E2
    assert tile_c % 128 == 0

    num_tiles = pl.cdiv(C, tile_c)          # partial last tile handled by Pallas
    grid = (num_tiles,)

    # Optional deeper weight pipeline (e.g. weight_buffers=3 on v7x if DMA is exposed).
    w_spec_kwargs = {}
    if weight_buffers is not None and weight_buffers != 2:
        w_spec_kwargs = dict(pipeline_mode=pl.Buffered(weight_buffers))
    w_spec = pl.BlockSpec((E, tile_c), lambda j: (0, j), **w_spec_kwargs)

    compiler_params = pltpu.CompilerParams(
        dimension_semantics=("parallel",),
        vmem_limit_bytes=vmem_limit_bytes)

    if y is None:
        return pl.pallas_call(
            _cos_only_kernel,
            out_shape=jax.ShapeDtypeStruct((B, C), out_dtype),
            grid_spec=pltpu.PrefetchScalarGridSpec(
                num_scalar_prefetch=0,
                grid=grid,
                in_specs=[pl.BlockSpec((B, E), lambda j: (0, 0)),   # x (full, resident)
                          w_spec],                                  # raw weight tile
                out_specs=pl.BlockSpec((B, tile_c), lambda j: (0, j)),
            ),
            compiler_params=compiler_params,
        )(x, weight)

    # --- per-row target quantities (O(B*E); only the B gathered columns are normed) ---
    x32 = x.astype(jnp.float32)
    wy = jnp.take(weight, y, axis=1).astype(jnp.float32)            # (E, B) target cols
    inv_y = lax.rsqrt(jnp.maximum(jnp.sum(wy * wy, axis=0), 1e-24)) # (B,)
    gt = jnp.sum(x32 * wy.T, axis=-1) * inv_y                       # cos_theta[i, y[i]]
    gt = jnp.clip(gt, -1.0, 1.0).reshape(B, 1)

    if fc_type == 'MV-AM':
        thresh = gt - margin
        final_gt = jnp.where(gt > 0.0, gt - margin, gt) if easy_margin else gt - margin
    elif fc_type == 'MV-Arc':
        sin_theta = jnp.sqrt(jnp.maximum(1.0 - gt * gt, 0.0))
        cos_theta_m = gt * math.cos(margin) - sin_theta * math.sin(margin)
        thresh = cos_theta_m
        final_gt = jnp.where(gt > 0.0, cos_theta_m, gt) if easy_margin else cos_theta_m
    else:
        raise ValueError('unknown fc type!')

    y2 = y.reshape(B, 1).astype(jnp.int32)
    thresh = thresh.astype(jnp.float32)
    final_gt = final_gt.astype(jnp.float32)

    kern = functools.partial(_mv_arc_kernel, t=float(t), scale=float(scale),
                             tile_c=tile_c)

    return pl.pallas_call(
        kern,
        out_shape=jax.ShapeDtypeStruct((B, C), out_dtype),
        grid_spec=pltpu.PrefetchScalarGridSpec(
            num_scalar_prefetch=0,
            grid=grid,
            in_specs=[
                pl.BlockSpec((B, 1), lambda j: (0, 0)),        # labels
                pl.BlockSpec((B, 1), lambda j: (0, 0)),        # thresh (per-row)
                pl.BlockSpec((B, 1), lambda j: (0, 0)),        # final_gt (per-row)
                pl.BlockSpec((B, E), lambda j: (0, 0)),        # x (full, resident)
                w_spec,                                        # raw weight class tile
            ],
            out_specs=pl.BlockSpec((B, tile_c), lambda j: (0, j)),
        ),
        compiler_params=compiler_params,
    )(y2, thresh, final_gt, x, weight)


def _reference(x, weight, y, *, fc_type='MV-AM', margin=0.35, t=0.2, scale=32.0,
               easy_margin=True):
    w32 = weight.astype(jnp.float32)
    x32 = x.astype(jnp.float32)
    kernel_norm = w32 / jnp.maximum(jnp.linalg.norm(w32, axis=0, keepdims=True), 1e-12)
    cos = x32 @ kernel_norm
    if y is None:
        return cos
    cos = jnp.clip(cos, -1.0, 1.0)
    gt = cos[jnp.arange(x.shape[0]), y][:, None]
    if fc_type == 'MV-AM':
        thresh = gt - margin
        final_gt = jnp.where(gt > 0, gt - margin, gt) if easy_margin else gt - margin
    elif fc_type == 'MV-Arc':
        sin_theta = jnp.sqrt(jnp.maximum(1.0 - gt * gt, 0.0))
        ctm = gt * math.cos(margin) - sin_theta * math.sin(margin)
        thresh = ctm
        final_gt = jnp.where(gt > 0, ctm, gt) if easy_margin else ctm
    else:
        raise ValueError('unknown fc type!')
    out = jnp.where(cos > thresh, (t + 1.0) * cos + t, cos)
    onehot = jax.nn.one_hot(y, weight.shape[1], dtype=bool)
    out = jnp.where(onehot, final_gt, out)
    return out * scale


if __name__ == "__main__":
    key = jax.random.PRNGKey(0)
    kx, kw, ky, kx2, kw2, ky2 = jax.random.split(key, 6)

    # ---- test 1: f32, C divisible by tile_c, MV-AM, plus y=None path -------------
    B, E, C = 8, 128, 1024
    weight = jax.random.uniform(kw, (E, C), jnp.float32, minval=-1.0, maxval=1.0)
    x = jax.random.normal(kx, (B, E), jnp.float32)
    x = x / jnp.linalg.norm(x, axis=1, keepdims=True)
    y = jax.random.randint(ky, (B,), 0, C, dtype=jnp.int32)

    out = jax.block_until_ready(mv_arc_forward(x, weight, y, tile_c=256))
    ref = jax.block_until_ready(_reference(x, weight, y))
    np.testing.assert_allclose(np.asarray(out), np.asarray(ref), atol=5e-4, rtol=5e-4)

    cos_only = jax.block_until_ready(mv_arc_forward(x, weight, None, tile_c=256))
    np.testing.assert_allclose(np.asarray(cos_only),
                               np.asarray(_reference(x, weight, None)),
                               atol=5e-4, rtol=5e-4)

    # ---- test 2: bf16 operands, C NOT divisible by tile_c (partial edge tile),
    # ----         MV-Arc branch ---------------------------------------------------
    B2, E2, C2 = 16, 128, 640
    weight2 = jax.random.uniform(kw2, (E2, C2), jnp.float32, minval=-1.0, maxval=1.0)
    x2 = jax.random.normal(kx2, (B2, E2), jnp.float32)
    x2 = x2 / jnp.linalg.norm(x2, axis=1, keepdims=True)
    y2 = jax.random.randint(ky2, (B2,), 0, C2, dtype=jnp.int32)
    x2b, w2b = x2.astype(jnp.bfloat16), weight2.astype(jnp.bfloat16)

    out2 = jax.block_until_ready(
        mv_arc_forward(x2b, w2b, y2, fc_type='MV-Arc', tile_c=256))
    ref2 = jax.block_until_ready(_reference(x2b, w2b, y2, fc_type='MV-Arc'))
    np.testing.assert_allclose(np.asarray(out2), np.asarray(ref2), atol=4e-3, rtol=4e-3)

    print("KERNEL_OK")
</pallas_src>

<mosaic_0001>
module attributes {stable_mosaic.version = 11 : i64} {
  func.func @_mv_arc_kernel(%arg0: i32, %arg1: memref<8x1xi32, #tpu.memory_space<vmem>>, %arg2: memref<8x1xf32, #tpu.memory_space<vmem>>, %arg3: memref<8x1xf32, #tpu.memory_space<vmem>>, %arg4: memref<8x128xf32, #tpu.memory_space<vmem>>, %arg5: memref<128x256xf32, #tpu.memory_space<vmem>>, %arg6: memref<8x256xf32, #tpu.memory_space<vmem>>) attributes {dimension_semantics = [#tpu.dimension_semantics<parallel>], iteration_bounds = array<i64: 4>, scalar_prefetch = 0 : i64, scratch_operands = 0 : i64, tpu.core_type = #tpu.core_type<tc>, window_params = [{pipeline_mode = #tpu.pipeline_mode<synchronous>, transform_indices = @transform_0, window_bounds = array<i64: 8, 1>}, {pipeline_mode = #tpu.pipeline_mode<synchronous>, transform_indices = @transform_1, window_bounds = array<i64: 8, 1>}, {pipeline_mode = #tpu.pipeline_mode<synchronous>, transform_indices = @transform_2, window_bounds = array<i64: 8, 1>}, {pipeline_mode = #tpu.pipeline_mode<synchronous>, transform_indices = @transform_3, window_bounds = array<i64: 8, 128>}, {transform_indices = @transform_4, window_bounds = array<i64: 128, 256>}, {transform_indices = @transform_5, window_bounds = array<i64: 8, 256>}]} {
    %c0 = arith.constant 0 : index
    %c0_0 = arith.constant 0 : index
    %0 = vector.load %arg5[%c0, %c0_0] : memref<128x256xf32, #tpu.memory_space<vmem>>, vector<128x256xf32>
    %1 = arith.mulf %0, %0 : vector<128x256xf32>
    %cst = arith.constant dense<0.000000e+00> : vector<256xf32>
    %2 = vector.multi_reduction <add>, %1, %cst [0] : vector<128x256xf32> to vector<256xf32>
    %3 = vector.shape_cast %2 : vector<256xf32> to vector<1x256xf32>
    %cst_1 = arith.constant 1.000000e-24 : f32
    %4 = vector.broadcast %cst_1 : f32 to vector<1x256xf32>
    %5 = arith.maximumf %3, %4 : vector<1x256xf32>
    %6 = math.rsqrt %5 : vector<1x256xf32>
    %c0_2 = arith.constant 0 : index
    %c0_3 = arith.constant 0 : index
    %7 = vector.load %arg4[%c0_2, %c0_3] : memref<8x128xf32, #tpu.memory_space<vmem>>, vector<8x128xf32>
    %cst_4 = arith.constant dense<0.000000e+00> : vector<8x256xf32>
    %8 = tpu.matmul %7, %0, %cst_4 {dimension_numbers = #tpu.dot_dimension_numbers<[1], [0], [0], [1], [0, 0, 1, 1], [], []>} : vector<8x128xf32>, vector<128x256xf32>, vector<8x256xf32> -> vector<8x256xf32>
    %9 = vector.broadcast %6 : vector<1x256xf32> to vector<8x256xf32>
    %10 = arith.mulf %8, %9 : vector<8x256xf32>
    %cst_5 = arith.constant -1.000000e+00 : f32
    %cst_6 = arith.constant 1.000000e+00 : f32
    %11 = vector.broadcast %cst_5 : f32 to vector<8x256xf32>
    %12 = arith.maximumf %11, %10 : vector<8x256xf32>
    %13 = vector.broadcast %cst_6 : f32 to vector<8x256xf32>
    %14 = arith.minimumf %13, %12 : vector<8x256xf32>
    %cst_7 = arith.constant 1.200000e+00 : f32
    %15 = vector.broadcast %cst_7 : f32 to vector<8x256xf32>
    %16 = arith.mulf %15, %14 : vector<8x256xf32>
    %cst_8 = arith.constant 2.000000e-01 : f32
    %17 = vector.broadcast %cst_8 : f32 to vector<8x256xf32>
    %18 = arith.addf %16, %17 : vector<8x256xf32>
    %c0_9 = arith.constant 0 : index
    %c0_10 = arith.constant 0 : index
    %19 = vector.load %arg2[%c0_9, %c0_10] : memref<8x1xf32, #tpu.memory_space<vmem>>, vector<8x1xf32>
    %20 = vector.broadcast %19 : vector<8x1xf32> to vector<8x256xf32>
    %21 = arith.cmpf ogt, %14, %20 : vector<8x256xf32>
    %22 = arith.select %21, %18, %14 : vector<8x256xi1>, vector<8x256xf32>
    %23 = tpu.iota {dimensions = array<i32: 1>} : vector<8x256xi32>
    %c0_11 = arith.constant 0 : index
    %c0_12 = arith.constant 0 : index
    %24 = vector.load %arg1[%c0_11, %c0_12] : memref<8x1xi32, #tpu.memory_space<vmem>>, vector<8x1xi32>
    %c256_i32 = arith.constant 256 : i32
    %25 = arith.muli %arg0, %c256_i32 : i32
    %26 = vector.broadcast %25 : i32 to vector<8x1xi32>
    %27 = arith.subi %24, %26 : vector<8x1xi32>
    %28 = vector.broadcast %27 : vector<8x1xi32> to vector<8x256xi32>
    %29 = arith.cmpi eq, %23, %28 : vector<8x256xi32>
    %c0_13 = arith.constant 0 : index
    %c0_14 = arith.constant 0 : index
    %30 = vector.load %arg3[%c0_13, %c0_14] : memref<8x1xf32, #tpu.memory_space<vmem>>, vector<8x1xf32>
    %31 = vector.shape_cast %30 : vector<8x1xf32> to vector<8x1xf32>
    %32 = vector.broadcast %31 : vector<8x1xf32> to vector<8x256xf32>
    %33 = arith.select %29, %32, %22 : vector<8x256xi1>, vector<8x256xf32>
    %cst_15 = arith.constant 3.200000e+01 : f32
    %34 = vector.broadcast %cst_15 : f32 to vector<8x256xf32>
    %35 = arith.mulf %33, %34 : vector<8x256xf32>
    %c0_16 = arith.constant 0 : index
    %c0_17 = arith.constant 0 : index
    %36 = vector.load %arg6[%c0_16, %c0_17] : memref<8x256xf32, #tpu.memory_space<vmem>>, vector<8x256xf32>
    tpu.vector_store %arg6[%c0_16, %c0_17], %35 {strides = array<i32>} : memref<8x256xf32, #tpu.memory_space<vmem>>, vector<8x256xf32>,
    return
  }
  func.func @transform_0(%arg0: i32) -> (i32, i32) {
    %c0_i32 = arith.constant 0 : i32
    %c0_i32_0 = arith.constant 0 : i32
    %c0_i32_1 = arith.constant 0 : i32
    return %c0_i32, %c0_i32_0 : i32, i32
  }
  func.func @transform_1(%arg0: i32) -> (i32, i32) {
    %c0_i32 = arith.constant 0 : i32
    %c0_i32_0 = arith.constant 0 : i32
    %c0_i32_1 = arith.constant 0 : i32
    return %c0_i32, %c0_i32_0 : i32, i32
  }
  func.func @transform_2(%arg0: i32) -> (i32, i32) {
    %c0_i32 = arith.constant 0 : i32
    %c0_i32_0 = arith.constant 0 : i32
    %c0_i32_1 = arith.constant 0 : i32
    return %c0_i32, %c0_i32_0 : i32, i32
  }
  func.func @transform_3(%arg0: i32) -> (i32, i32) {
    %c0_i32 = arith.constant 0 : i32
    %c0_i32_0 = arith.constant 0 : i32
    %c0_i32_1 = arith.constant 0 : i32
    return %c0_i32, %c0_i32_0 : i32, i32
  }
  func.func @transform_4(%arg0: i32) -> (i32, i32) {
    %c0_i32 = arith.constant 0 : i32
    %c0_i32_0 = arith.constant 0 : i32
    return %c0_i32, %arg0 : i32, i32
  }
  func.func @transform_5(%arg0: i32) -> (i32, i32) {
    %c0_i32 = arith.constant 0 : i32
    %c0_i32_0 = arith.constant 0 : i32
    return %c0_i32, %arg0 : i32, i32
  }
}

</mosaic_0001>

<bundles_post_ra>
// kernel: tpu_custom_call.1
= control target key start
LH: loop header
LB: loop body
LE: loop exit
PB: predicated region body
PF: predicated region fallthrough
CT: control target
= control target key end

     0   :  { %10 = vsyncpa [#allocation3], 0  ;;  %s1065_s0 = inlined_call_operand.vmem [shape: s32[8,1], index: 0, kind: input, shape index: {}]   ;;  %s1066_s1 = inlined_call_operand.vmem [shape: f32[8,1], index: 1, kind: input, shape index: {}]   ;;  %s1067_s2 = inlined_call_operand.vmem [shape: f32[8,1], index: 2, kind: input, shape index: {}]   ;;  %s1068_s3 = inlined_call_operand.vmem [shape: f32[8,128], index: 3, kind: input, shape index: {}]   ;;  %s1069_s4 = inlined_call_operand.hbm [shape: f32[128,1024], index: 4, kind: input, shape index: {}]   ;;  %s1070_s5 = inlined_call_operand.hbm [shape: f32[8,1024], index: 5, kind: output, shape index: {}]  }
   0x1   :  { %12 = vsyncpa [#allocation3 + $0x1], 0 }
   0x2   :  { %13 = vsyncpa [#allocation4], 0 }
   0x3   :  { %15 = vsyncpa [#allocation4 + $0x1], 0  ;;  %s763_s18 = smov 0   ;;  %s765_s19 = smov 0  }
   0x4   :  { %s767_s20 = smov 0   ;;  %s769_s21 = smov 0  }
   0x5 LB: > { %s784_s22 = sadd.s32 4294967295, %s724_s21   ;;  %s556_s23 = sadd.s32 4294967294, %s724_s21   ;;  %s724_s21 = sphi %s769_s21, %s1085_s21   ;;  %s720_s20 = sphi %s767_s20, %s1084_s20   ;;  %s716_s19 = sphi %s765_s19, %s1083_s19   ;;  %s712_s18 = sphi %s763_s18, %s1082_s18  }
   0x6   : > { %s788_s24 = sadd.s32 1, %s724_s21   ;;  %s112_s25 = sadd.s32 1, %s720_s20 }
   0x7   : > { %s109_s26 = ssub.s32 %s724_s21, %s788_s24  ;;  %p119_p0 = scmp.ne.s32.totalorder %s720_s20, %s716_s19 }
   0x8   : > { %p110_p1 = scmp.eq.s32.totalorder %s109_s26, 0  ;;  %p120_p2 = scmp.eq.s32.totalorder %s724_s21, 0 }
   0x9   : > { %p125_p3 = scmp.ne.s32.totalorder %s716_s19, %s712_s18  ;;  %p126_p4 = scmp.eq.s32.totalorder %s784_s22, 0 }
   0xa   : > { %s800_s27 = scalar_select %p110_p1, %s720_s20, %s112_s25  }
   0xb   : > { %p802_p5 = por %p120_p2, %p119_p0  ;;  %p806_p6 = por %p126_p4, %p125_p3 }
   0xc   : > { %p149_p7 = scmp.eq.s32.totalorder %s784_s22, 3  ;;  %p155_p8 = scmp.eq.s32.totalorder %s556_s23, 3 }
   0xd   : > { %s1074_s29 = scalar_select %p806_p6, 1, 0 }
   0xe   : > { %p587_p9 = scmp.lt.s32.totalorder %s724_s21, 4  ;;  %p812_p10 = por %p149_p7, %p119_p0 }
   0xf   : > { %p816_p11 = por %p155_p8, %p125_p3  ;;  %s187_s7 = sand.u32 1, %s720_s20  }
  0x10   : > { %s1075_s30 = scalar_select %p812_p10, 1, 0 }
  0x11   : > { %s1076_s6 = scalar_select %p816_p11, 1, 0 }
  0x12   : > { %s573_s8 = sshll.u32 %s724_s21, 8  ;;  %s559_s9 = sshll.u32 %s187_s7, 8 }
  0x13   : > { %s825_s12 = scalar_lea.hbm %s1069_s4, %s573_s8  ;;  %s191_s13 = scalar_lea.vmem [#allocation2], %s559_s9 }
  0x14   : > { %s198_s14 = sshll.u32 %s191_s13, 4  ;;  %p829_p12 = pnand %p587_p9, %p802_p5  ;;  %s833_s14 = int_to_ptr.vmem [resolvable:$true] %s198_s14 }
  0x15   : > { %s836_s16 = scalar_lea.sflag [#allocation3], %s187_s7  ;;  %s632_s17 = scalar_lea.hbm %s825_s12, 4096 }
  0x16   : > { %p633_p0 = scmp.ne.s32.totalorder %s825_s12, %s632_s17  ;;  %p634_p1 = pneg %p829_p12 }
  0x17   : > { %s637_s26 = scalar_lea.hbm %s1069_s4, 16384  ;;  %p638_p4 = scmp.lt.s32.totalorder %s825_s12, %s1069_s4 }
  0x18   : > { %p635_p2 = pnand %p634_p1, %p633_p0  ;;  %p639_p5 = scmp.lt.s32.totalorder %s637_s26, %s632_s17 }
  0x1a   : > { %p636_p3 = pneg %p635_p2  ;;  %p640_p7 = por %p639_p5, %p638_p4 }
  0x1c   : > { %p641_p8 = pnand %p640_p7, %p636_p3 }
  0x1e   : > { %644 = shalt.err (!%p641_p8)
}
  0x1f   : > { %s645_s7 = scalar_lea.vmem %s833_s14, 4096  ;;  %s726_s9 = smov [#allocation2]  }
  0x20   : > { %p646_p9 = scmp.ne.s32.totalorder %s833_s14, %s645_s7  ;;  %s650_s10 = sshll.u32 %s726_s9, 4  ;;  %s651_s10 = int_to_ptr.vmem [resolvable:$false] %s650_s10 }
  0x21   : > { %s652_s11 = scalar_lea.vmem %s651_s10, 8192  ;;  %p653_p2 = scmp.lt.s32.totalorder %s833_s14, %s651_s10 }
  0x22   : > { %p648_p13 = pnand %p646_p9, %p634_p1  ;;  %p654_p11 = scmp.lt.s32.totalorder %s652_s11, %s645_s7 }
  0x24   : > { %p649_p0 = pneg %p648_p13  ;;  %p655_p10 = por %p654_p11, %p653_p2 }
  0x26   : > { %p656_p6 = pnand %p655_p10, %p649_p0 }
  0x28   : > { %659 = shalt.err (!%p656_p6)
}
  0x29   : > { %s727_s13 = smov 1024   ;;  %s728_s17 = smov 256  }
  0x2a   : > { %s729_s23 = smov 16   ;;  %p206_p13 = scmp.lt.s32.totalorder %s724_s21, 5 }
  0x2b   : > { %582 = dma.hbm_to_vmem [thread:$0]  (!%p829_p12), %s825_s12, 4096, %s833_s14, %s836_s16, %s727_s13, %s728_s17, %s729_s23  }
  0x2c   : > { %p1078_p1 = scmp.ge.s32.totalorder %s724_s21, 1 }
  0x2e   : > { %p207_p3 = pnand %p1078_p1, %p206_p13 }
  0x2f   : > { %s861_s25 = sand.u32 (!%p207_p3), 1, %s716_s19   ;;  %p1079_p6 = scmp.ne.s32.totalorder (!%p207_p3), %s1074_s29, 0 }
  0x30   : > { %210 = sbr.rel (%p207_p3) target bundleno = 308 (0x134), region = 40  ;;  %s563_s26 = sshll.u32 (!%p207_p3), %s861_s25, 8 }
  0x31   : > { %s213_s28 = scalar_lea.sflag (!%p207_p3), [#allocation3], %s861_s25  ;;  %s865_s8 = scalar_lea.vmem (!%p207_p3), [#allocation2], %s563_s26 }
  0x35   : > { %703 = dma.done.wait (%p1079_p6), %s213_s28, 4096  }
  0x36   : > { %705 = vsyncadd (%p1079_p6), %s213_s28, 4294963200  ;;  %v730_v0 = vmov 0.0   ;;  %v731_v1 = vmov 0   ;;  %v872_v2 = vld [vmem:[%s865_s8 + $0xf8] sm:$0xff]  ;;  %v875_v3 = vld [vmem:[%s865_s8 + $0xf0] sm:$0xff]  ;;  %s567_s29 = sshll.u32 %s784_s22, 8 }
  0x37   : > { %420 = vmatprep.mubr.f32.mxu0 %v730_v0  ;;  %626 = vset.pattern.permute.xlu0 %v731_v1  ;;  %v878_v4 = vld [vmem:[%s865_s8 + $0xe8] sm:$0xff]  ;;  %v882_v5 = vld [vmem:[%s865_s8 + $0xe0] sm:$0xff]  ;;  %v886_v6 = vld [vmem:[%s865_s8 + $0xd8] sm:$0xff]  ;;  %v452_v20 = vstv %s567_s29  ;;  %s564_s13 = sshll.u32 %s861_s25, 4  ;;  %s472_s12 = scalar_lea.sflag [#allocation4], %s861_s25 }
  0x38   : > { %627 = vset.pattern.permute.xlu1 %v731_v1  ;;  %356 = vmatprep.subr.mxu0 %v872_v2  ;;  %v890_v7 = vld [vmem:[%s865_s8 + $0xd0] sm:$0xff]  ;;  %v894_v8 = vld [vmem:[%s865_s8 + $0xc8] sm:$0xff]  ;;  %v898_v9 = vld [vmem:[%s865_s8 + $0xc0] sm:$0xff]  ;;  %s242_s17 = scalar_lea.vmem [#allocation5], %s564_s13  ;;  %p1080_p11 = scmp.ne.s32.totalorder %s1075_s30, 0 }
  0x39   : > { %357 = vmatpush1.msra.mxu0 %v875_v3  ;;  %v902_v10 = vld [vmem:[%s865_s8 + $0xb8] sm:$0xff]  ;;  %v907_v11 = vld [vmem:[%s865_s8 + $0xb0] sm:$0xff]  ;;  %v911_v12 = vld [vmem:[%s865_s8 + $0xa8] sm:$0xff]  ;;  %s486_s23 = sshll.u32 %s242_s17, 4  ;;  %s732_s15 = smov [#allocation5]   ;;  %s487_s23 = int_to_ptr.vmem [resolvable:$true] %s486_s23 }
  0x3a   : > { %358 = vmatprep.subr.mxu0 %v878_v4  ;;  %v914_v13 = vld [vmem:[%s865_s8 + $0xa0] sm:$0xff]  ;;  %v917_v14 = vld [vmem:[%s865_s8 + $0x98] sm:$0xff]  ;;  %v921_v15 = vld [vmem:[%s865_s8 + $0x90] sm:$0xff]  ;;  %s660_s14 = scalar_lea.vmem %s487_s23, 256  ;;  %s664_s16 = sshll.u32 %s732_s15, 4  ;;  %s665_s16 = int_to_ptr.vmem [resolvable:$false] %s664_s16 }
  0x3b   : > { %359 = vmatpush1.msra.mxu0 %v882_v5  ;;  %v924_v16 = vld [vmem:[%s865_s8 + $0x38] sm:$0xff]  ;;  %v927_v17 = vld [vmem:[%s865_s8 + $0x28] sm:$0xff]  ;;  %v933_v19 = vld [vmem:[%s865_s8 + $0x10] sm:$0xff]  ;;  %p661_p10 = scmp.ne.s32.totalorder %s487_s23, %s660_s14  ;;  %s666_s22 = scalar_lea.vmem %s665_s16, 512 }
  0x3c   : > { %360 = vmatprep.subr.mxu0 %v886_v6  ;;  %v930_v18 = vld [vmem:[%s865_s8 + $0x18] sm:$0xff]  ;;  %v939_v21 = vld [vmem:[%s865_s8 + $0x20] sm:$0xff]  ;;  %v279_v23 = vmul.f32 %v933_v19, %v933_v19  ;;  %v946_v24 = vld [vmem:[%s865_s8 + $0x8] sm:$0xff]  ;;  %v282_v26 = vmul.f32 %v927_v17, %v927_v17  ;;  %v284_v34 = vmul.f32 %v924_v16, %v924_v16  ;;  %p667_p5 = scmp.lt.s32.totalorder %s487_s23, %s665_s16  ;;  %p668_p7 = scmp.lt.s32.totalorder %s666_s22, %s660_s14 }
  0x3d   : > { %361 = vmatpush1.msra.mxu0 %v890_v7  ;;  %v280_v22 = vmul.f32 %v930_v18, %v930_v18  ;;  %v949_v25 = vld [vmem:[%s865_s8] sm:$0xff]  ;;  %v281_v27 = vmul.f32 %v939_v21, %v939_v21  ;;  %v278_v28 = vmul.f32 %v946_v24, %v946_v24  ;;  %v262_v33 = vld [vmem:[%s865_s8 + $0x88] sm:$0xff]  ;;  %v251_v35 = vld [vmem:[%s865_s8 + $0x30] sm:$0xff]  ;;  %p662_p12 = pnand %p661_p10, %p1080_p11 }
  0x3e   : > { %362 = vmatprep.subr.mxu0 %v894_v8  ;;  %v277_v29 = vmul.f32 %v949_v25, %v949_v25  ;;  %v437_v30 = vld [vmem:[%s1066_s1] sm:$0xff]  ;;  %v283_v38 = vmul.f32 %v251_v35, %v251_v35  ;;  %v260_v41 = vld [vmem:[%s865_s8 + $0x78] sm:$0xff]  ;;  %v254_v42 = vld [vmem:[%s865_s8 + $0x48] sm:$0xff]  ;;  %v294_v1 = vmul.f32 %v262_v33, %v262_v33  ;;  %p669_p8 = por %p668_p7, %p667_p5 }
  0x3f   : > { %363 = vmatpush1.msra.mxu0 %v898_v9  ;;  %v450_v31 = vld [vmem:[%s1065_s0] sm:$0xff]  ;;  %440 = vperm.xlu0 %626, %v437_v30   ;;  %v330_v39 = vadd.f32 %v280_v22, %v278_v28  ;;  %v259_v44 = vld [vmem:[%s865_s8 + $0x70] sm:$0xff]  ;;  %v286_v45 = vmul.f32 %v254_v42, %v254_v42  ;;  %v258_v49 = vld [vmem:[%s865_s8 + $0x68] sm:$0xff]  ;;  %v292_v61 = vmul.f32 %v260_v41, %v260_v41  ;;  %p663_p4 = pneg %p662_p12 }
  0x40   : > { %364 = vmatprep.subr.mxu0 %v902_v10  ;;  %v459_v32 = vld [vmem:[%s1067_s2] sm:$0xff]  ;;  %v453_v36 = vsub.s32 %v450_v31, %v452_v20  ;;  %v309_v40 = vadd.f32 %v279_v23, %v277_v29  ;;  %v256_v50 = vld [vmem:[%s865_s8 + $0x58] sm:$0xff]  ;;  %v255_v51 = vld [vmem:[%s865_s8 + $0x50] sm:$0xff]  ;;  %v290_v57 = vmul.f32 %v258_v49, %v258_v49  ;;  %v291_v62 = vmul.f32 %v259_v44, %v259_v44 }
  0x41   : > { %365 = vmatpush1.msra.mxu0 %v907_v11  ;;  %v261_v37 = vld [vmem:[%s865_s8 + $0x80] sm:$0xff]  ;;  %462 = vperm.xlu1 %627, %v459_v32   ;;  %v331_v47 = vadd.f32 %v330_v39, %v282_v26  ;;  %v288_v53 = vmul.f32 %v256_v50, %v256_v50  ;;  %v287_v54 = vmul.f32 %v255_v51, %v255_v51  ;;  %p670_p9 = pnand %p669_p8, %p663_p4 }
  0x42   : > { %366 = vmatprep.subr.mxu0 %v911_v12  ;;  %v253_v43 = vld [vmem:[%s865_s8 + $0x40] sm:$0xff]  ;;  %v310_v48 = vadd.f32 %v309_v40, %v281_v27  ;;  %v293_v20 = vmul.f32 %v261_v37, %v261_v37  ;;  %v296_v26 = vmul.f32 %v917_v14, %v917_v14  ;;  %v295_v27 = vmul.f32 %v921_v15, %v921_v15 }
  0x43   : > { %367 = vmatpush1.msra.mxu0 %v914_v13  ;;  %v285_v46 = vmul.f32 %v253_v43, %v253_v43  ;;  %455 = vperm.xlu0 %626, %v453_v36   ;;  %v257_v52 = vld [vmem:[%s865_s8 + $0x60] sm:$0xff]  ;;  %v332_v55 = vadd.f32 %v331_v47, %v284_v34  ;;  %v298_v30 = vmul.f32 %v911_v12, %v911_v12  ;;  %s1029_s8 = scalar_lea.hbm %s1070_s5, %s567_s29 }
  0x44   : > { %368 = vmatprep.subr.mxu0 %v917_v14  ;;  %v311_v56 = vadd.f32 %v310_v48, %v283_v38  ;;  %v289_v58 = vmul.f32 %v257_v52, %v257_v52  ;;  %v297_v31 = vmul.f32 %v914_v13, %v914_v13  ;;  %v300_v14 = vmul.f32 %v902_v10, %v902_v10  ;;  %v355_v12 = vld [vmem:[%s1068_s3] sm:$0xff] }
  0x45   : > { %369 = vmatpush1.msra.mxu0 %v921_v15  ;;  %v333_v59 = vadd.f32 %v332_v55, %v286_v45  ;;  %v299_v15 = vmul.f32 %v907_v11, %v907_v11  ;;  %v302_v13 = vmul.f32 %v894_v8, %v894_v8  ;;  %v308_v39 = vmul.f32 %v872_v2, %v872_v2 }
  0x46   : > { %370 = vmatprep.subr.mxu0 %v262_v33  ;;  %v312_v60 = vadd.f32 %v311_v56, %v285_v46 }
  0x47   : > { %371 = vmatpush1.msra.mxu0 %v261_v37  ;;  %v334_v63 = vadd.f32 %v333_v59, %v288_v53  ;;  %v447_v53 = vlaneseq }
  0x48   : > { %372 = vmatprep.subr.mxu0 %v260_v41  ;;  %v313_v0 = vadd.f32 %v312_v60, %v287_v54 }
  0x49   : > { %373 = vmatpush1.msra.mxu0 %v259_v44  ;;  %v335_v22 = vadd.f32 %v334_v63, %v290_v57 }
  0x4a   : > { %374 = vmatprep.subr.mxu0 %v258_v49  ;;  %v314_v23 = vadd.f32 %v313_v0, %v289_v58 }
  0x4b   : > { %375 = vmatpush1.msra.mxu0 %v257_v52  ;;  %v336_v28 = vadd.f32 %v335_v22, %v292_v61  ;;  %v448_v61 = vand.u32 127, %v447_v53 }
  0x4c   : > { %376 = vmatprep.subr.mxu0 %v256_v50  ;;  %v315_v29 = vadd.f32 %v314_v23, %v291_v62 }
  0x4d   : > { %377 = vmatpush1.msra.mxu0 %v255_v51  ;;  %v337_v32 = vadd.f32 %v336_v28, %v294_v1  ;;  %v449_v22 = vadd.s32 128, %v448_v61 }
  0x4e   : > { %378 = vmatprep.subr.mxu0 %v254_v42  ;;  %v316_v33 = vadd.f32 %v315_v29, %v293_v20 }
  0x4f   : > { %379 = vmatpush1.msra.mxu0 %v253_v43 }
  0x50   : > { %380 = vmatprep.subr.mxu0 %v924_v16  ;;  %v338_v16 = vadd.f32 %v337_v32, %v296_v26  ;;  %v317_v34 = vadd.f32 %v316_v33, %v295_v27 }
  0x51   : > { %381 = vmatpush1.msra.mxu0 %v251_v35  ;;  %v305_v35 = vmul.f32 %v882_v5, %v882_v5 }
  0x52   : > { %382 = vmatprep.subr.mxu0 %v927_v17  ;;  %v301_v17 = vmul.f32 %v898_v9, %v898_v9  ;;  %v339_v10 = vadd.f32 %v338_v16, %v298_v30  ;;  %v318_v11 = vadd.f32 %v317_v34, %v297_v31  ;;  %v307_v9 = vmul.f32 %v875_v3, %v875_v3 }
  0x53   : > { %383 = vmatpush1.msra.mxu0 %v939_v21 }
  0x54   : > { %384 = vmatprep.subr.mxu0 %v930_v18  ;;  %v303_v18 = vmul.f32 %v890_v7, %v890_v7  ;;  %v319_v21 = vadd.f32 %v318_v11, %v299_v15  ;;  %v306_v7 = vmul.f32 %v878_v4, %v878_v4 }
  0x55   : > { %385 = vmatpush1.msra.mxu0 %v933_v19  ;;  %v340_v19 = vadd.f32 %v339_v10, %v300_v14 }
  0x56   : > { %386 = vmatprep.subr.mxu0 %v946_v24  ;;  %v320_v8 = vadd.f32 %v319_v21, %v301_v17 }
  0x57   : > { %387 = vmatpush1.msra.mxu0 %v949_v25  ;;  %v341_v36 = vadd.f32 %v340_v19, %v302_v13  ;;  %v304_v25 = vmul.f32 %v886_v6, %v886_v6 }
  0x58   : > { %421 = vmatmul.mubr.f32.vlgmr.msra.gmra.mxu0 %v355_v12  ;;  %v321_v37 = vadd.f32 %v320_v8, %v303_v18 }
  0x59   : > { %v342_v40 = vadd.f32 %v341_v36, %v304_v25 }
  0x5a   : > { %v322_v38 = vadd.f32 %v321_v37, %v305_v35 }
  0x5b   : > { %v343_v41 = vadd.f32 %v342_v40, %v306_v7 }
  0x5c   : > { %v323_v24 = vadd.f32 %v322_v38, %v307_v9 }
  0x5d   : > { %v344_v5 = vadd.f32 %v343_v41, %v308_v39 }
  0x5e   : > { %v324_v42 = vrot.slane %v323_v24, 4 }
  0x5f   : > { %v345_v43 = vrot.slane %v344_v5, 4 }
  0x60   : > { %v325_v44 = vadd.f32 %v324_v42, %v323_v24 }
  0x61   : > { %v346_v45 = vadd.f32 %v345_v43, %v344_v5 }
  0x62   : > { %v326_v3 = vrot.slane %v325_v44, 2 }
  0x63   : > { %v347_v46 = vrot.slane %v346_v45, 2 }
  0x64   : > { %v327_v47 = vadd.f32 %v326_v3, %v325_v44 }
  0x65   : > { %v348_v48 = vadd.f32 %v347_v46, %v346_v45 }
  0x66   : > { %v328_v49 = vrot.slane %v327_v47, 1 }
  0x67   : > { %v349_v50 = vrot.slane %v348_v48, 1 }
  0x68   : > { %v329_v6 = vadd.f32 %v328_v49, %v327_v47 }
  0x69   : > { %v350_v51 = vadd.f32 %v349_v50, %v348_v48 }
  0x6a   : > { %v351_v4 = vmax.f32 %v329_v6, 1e-24 }
  0x6b   : > { %v352_v52 = vmax.f32 %v350_v51, 1e-24 }
  0x6c   : > { %628 = vrsqrt.f32 %v351_v4 }
  0x6d   : > { %630 = vrsqrt.f32 %v352_v52 }
  0x79   : > { %v629_v2 = vpop.eup %628 }
  0x7a   : > { %v631_v54 = vpop.eup %630 }
  0xba   : > { %v441_v56 = vpop.permute.xlu0 %440 }
  0xbc   : > { %v463_v23 = vpop.permute.xlu1 %462 }
  0xbe   : > { %v456_v0 = vpop.permute.xlu0 %455 }
  0xbf   : > { %vm457_vm1 = vcmp.eq.s32.totalorder %v448_v61, %v456_v0  ;;  %vm458_vm3 = vcmp.eq.s32.totalorder %v449_v22, %v456_v0 }
 0x118   : > { %v422_v55 = vpop.f32.mrf.mxu0 }
 0x119   : > { %v427_v57 = vmul.f32 %v629_v2, %v422_v55 }
 0x11a   : > { %v424_v58 = vpop.f32.mrf.mxu0 }
 0x11b   : > { %v565_v59 = vclamps-f32 %v427_v57, 1.0  ;;  %v428_v60 = vmul.f32 %v631_v54, %v424_v58 }
 0x11d   : > { %v433_v62 = vmul.f32 1.2, %v565_v59  ;;  %v566_v63 = vclamps-f32 %v428_v60, 1.0  ;;  %vm443_vm0 = vcmp.gt.f32.partialorder %v565_v59, %v441_v56 }
 0x11f   : > { %v435_v1 = vadd.f32 0.2, %v433_v62  ;;  %v434_v20 = vmul.f32 1.2, %v566_v63  ;;  %vm444_vm2 = vcmp.gt.f32.partialorder %v566_v63, %v441_v56 }
 0x121   : > { %v436_v26 = vadd.f32 0.2, %v434_v20  ;;  %v445_v27 = vsel %vm443_vm0, %v435_v1, %v565_v59 }
 0x122   : > { %v465_v28 = vsel %vm457_vm1, %v463_v23, %v445_v27 }
 0x123   : > { %v446_v29 = vsel %vm444_vm2, %v436_v26, %v566_v63  ;;  %v467_v30 = vmul.f32 32.0, %v465_v28 }
 0x124   : > { %v466_v31 = vsel %vm458_vm3, %v463_v23, %v446_v29 }
 0x125   : > { %v468_v32 = vmul.f32 32.0, %v466_v31  ;;  %469 = vst [vmem:[%s242_s17] sm:$0xff] %v467_v30 }
 0x127   : > { %470 = vst [vmem:[%s242_s17 + $0x8] sm:$0xff] %v468_v32 }
 0x128   : > { %673 = shalt.err (!%p670_p9)
}
 0x129   : > { %s674_s29 = scalar_lea.hbm %s1029_s8, 256  ;;  %s678_s9 = scalar_lea.hbm %s1070_s5, 1024 }
 0x12a   : > { %p675_p0 = scmp.ne.s32.totalorder %s1029_s8, %s674_s29  ;;  %p679_p1 = scmp.lt.s32.totalorder %s1029_s8, %s1070_s5 }
 0x12b   : > { %p680_p3 = scmp.lt.s32.totalorder %s678_s9, %s674_s29 }
 0x12c   : > { %p676_p2 = pnand %p675_p0, %p1080_p11 }
 0x12d   : > { %p681_p6 = por %p680_p3, %p679_p1 }
 0x12e   : > { %p677_p13 = pneg %p676_p2 }
 0x130   : > { %p682_p10 = pnand %p681_p6, %p677_p13 }
 0x132   : > { %685 = shalt.err (!%p682_p10)
}
 0x133   : > { %577 = dma.vmem_to_hbm [thread:$0]  (%p1080_p11), %s487_s23, 256, %s1029_s8, %s472_s12  }
 0x134 PF: > { %p588_p12 = scmp.ge.s32.totalorder %s724_s21, 2  ;;  %s498_s13 = sand.u32 1, %s712_s18  }
 0x135   : > { %p1081_p4 = scmp.ne.s32.totalorder %s1076_s6, 0  ;;  %s499_s17 = scalar_lea.sflag [#allocation4], %s498_s13 }
 0x137   : > { %p584_p5 = pnand %p588_p12, %p1081_p4 }
 0x139   : > { %p585_p7 = pneg %p584_p5 }
 0x13b   : > { %707 = dma.done.wait (%p585_p7), %s499_s17, 256  }
 0x13c   : > { %709 = vsyncadd (%p585_p7), %s499_s17, 4294967040  ;;  %p18_p8 = scmp.ge.s32.totalorder %s788_s24, 6   ;;  %s1082_s18 = smov %s716_s19 }
 0x13d   : > { %s1083_s19 = smov %s720_s20  ;;  %s1084_s20 = smov %s800_s27 }
 0x13e   : > { %s1085_s21 = smov %s788_s24  ;;  %20 = sbr.rel (!%p18_p8) target bundleno = 5 (0x5), region = 85 }
 0x143   :  { %504 = vsyncpa [#allocation3], 1 }
 0x144   :  { %506 = vsyncpa [#allocation3 + $0x1], 1 }
 0x145   :  { %507 = vsyncpa [#allocation4], 1 }
 0x146   :  { %509 = vsyncpa [#allocation4 + $0x1], 1 }

</bundles_post_ra>
